<compile_context>
chip_gen: v7x
topology: tpu7x:2x2x1
jax: 0.10.0
libtpu: 0.0.40
codegen_flags: <defaults>
</compile_context>

<pallas_src>
import functools
import numbers

import numpy as np
import jax
import jax.numpy as jnp
from jax.experimental import pallas as pl
from jax.experimental.pallas import tpu as pltpu


# ------------------------------- helpers ----------------------------------- #

def _cdiv(a, b):
    return -(-a // b)


def _vmem_budget_bytes():
    """Per-grid-step VMEM footprint budget (covers the double-buffered blocks).

    Generation-aware: ~1/4 of physical VMEM, capped at 24 MiB so it stays well
    inside every generation's limits (v5e/v6e: 128 MiB physical, 16/32 MiB
    scoped default; v7x: 64 MiB physical, 32 MiB scoped default).
    """
    cap = None
    try:
        cap = pltpu.get_tpu_info().vmem_capacity_bytes
    except Exception:
        cap = None
    if not cap:
        cap = 64 << 20  # smallest physical VMEM across v5e/v6e/v7x
    return int(max(2 << 20, min(cap // 4, 24 << 20)))


def _choose_pb(P, per_plane_footprint_bytes, budget_bytes):
    """Planes per grid step.

    Take as many planes as fit the footprint budget, but keep at least
    min(P, 4) grid steps so v7x can shard the parallel axis over its two
    TensorCores.  No divisor search: ragged last blocks are handled with a
    statically-sized DMA, so prime P no longer collapses to pb=1.
    """
    pb = max(1, int(budget_bytes // max(per_plane_footprint_bytes, 1)))
    pb = min(pb, P)
    min_steps = min(P, 4)
    if min_steps > 1:
        pb = max(1, min(pb, _cdiv(P, min_steps)))
    return pb


# ----------------------------- Pallas kernels ------------------------------ #

def _center_crop_dma_kernel(x_hbm, o_ref, sem, *, top, left, pb, rem):
    """DMA the (top:top+th, left:left+tw) window of up to `pb` planes straight
    from HBM into the pipelined VMEM output block.

    x_hbm : raw HBM ref (P, H, W)   (memory_space=pl.ANY, no auto-DMA)
    o_ref : VMEM (pb, th, tw) output block
    Only th*tw elements per plane are read from HBM and there is no
    VMEM->VMEM slice — the strided crop happens inside the DMA.
    """
    th = o_ref.shape[-2]
    tw = o_ref.shape[-1]
    p = pl.program_id(0)
    start = p * pb

    def copy(n):
        cp = pltpu.make_async_copy(
            x_hbm.at[pl.ds(start, n), pl.ds(top, th), pl.ds(left, tw)],
            o_ref.at[pl.ds(0, n)],
            sem,
        )
        cp.start()
        cp.wait()

    if rem == 0:            # pb divides P: every block is full (static branch)
        copy(pb)
    else:                   # statically-sized ragged last block
        last = pl.num_programs(0) - 1

        @pl.when(p != last)
        def _():
            copy(pb)

        @pl.when(p == last)
        def _():
            copy(rem)


def _center_crop_copy_kernel(x_ref, o_ref, *, top, left):
    """Fallback: full-plane fetch + native-dtype VMEM slice copy."""
    th = o_ref.shape[-2]
    tw = o_ref.shape[-1]
    o_ref[...] = x_ref[:, top:top + th, left:left + tw]


# ------------------------------ crop drivers ------------------------------- #

def _crop_window_dma(x3, top, left, th, tw, budget):
    P = x3.shape[0]
    itemsize = np.dtype(x3.dtype).itemsize
    # Footprint per step: double-buffered output block only (input stays in HBM).
    per_plane = 2 * th * tw * itemsize
    pb = _choose_pb(P, per_plane, budget)
    grid = (_cdiv(P, pb),)
    rem = P % pb
    vmem_limit = int(min(32 << 20, max(8 << 20, pb * per_plane + (2 << 20))))
    return pl.pallas_call(
        functools.partial(_center_crop_dma_kernel,
                          top=top, left=left, pb=pb, rem=rem),
        out_shape=jax.ShapeDtypeStruct((P, th, tw), x3.dtype),
        grid_spec=pltpu.PrefetchScalarGridSpec(
            num_scalar_prefetch=0,
            grid=grid,
            in_specs=[pl.BlockSpec(memory_space=pl.ANY)],   # raw HBM ref
            out_specs=pl.BlockSpec((pb, th, tw), lambda p: (p, 0, 0)),
            scratch_shapes=[pltpu.SemaphoreType.DMA(())],
        ),
        compiler_params=pltpu.CompilerParams(
            dimension_semantics=("parallel",),
            vmem_limit_bytes=vmem_limit),
    )(x3)


def _crop_full_copy(x3, top, left, th, tw, budget):
    P, H, W = x3.shape
    itemsize = np.dtype(x3.dtype).itemsize
    # Real footprint: double-buffered input plane AND output window per step.
    per_plane = 2 * (H * W + th * tw) * itemsize
    pb = _choose_pb(P, per_plane, budget)
    grid = (_cdiv(P, pb),)
    vmem_limit = int(min(32 << 20, max(8 << 20, pb * per_plane + (2 << 20))))
    return pl.pallas_call(
        functools.partial(_center_crop_copy_kernel, top=top, left=left),
        out_shape=jax.ShapeDtypeStruct((P, th, tw), x3.dtype),
        grid_spec=pltpu.PrefetchScalarGridSpec(
            num_scalar_prefetch=0,
            grid=grid,
            in_specs=[pl.BlockSpec((pb, H, W), lambda p: (p, 0, 0))],
            out_specs=pl.BlockSpec((pb, th, tw), lambda p: (p, 0, 0)),
        ),
        compiler_params=pltpu.CompilerParams(
            dimension_semantics=("parallel",),
            vmem_limit_bytes=vmem_limit),
    )(x3)


_WINDOW_DMA_OK = [True]   # flipped off if the strided-window DMA fails to lower


def pallas_crop(img, top, left, height, width, *, vmem_budget_bytes=None):
    """Crop img[..., top:top+height, left:left+width] via a Pallas TPU kernel.

    `img` is a jnp array with shape (..., H, W); offsets/sizes are static
    Python ints (CenterCrop windows are deterministic).
    """
    if img.ndim < 2:
        raise ValueError("Expected an array with at least 2 dimensions")
    *lead, H, W = img.shape
    top, left, height, width = int(top), int(left), int(height), int(width)
    if not (0 <= top and top + height <= H and 0 <= left and left + width <= W):
        raise ValueError("Crop window out of bounds")
    if top == 0 and left == 0 and height == H and width == W:
        return img                                    # nothing to crop

    P = int(np.prod(lead)) if lead else 1
    x3 = img.reshape(P, H, W)
    budget = _vmem_budget_bytes() if vmem_budget_bytes is None else int(vmem_budget_bytes)
    # TODO(synk): crop windows whose th*tw block alone exceeds the VMEM budget
    # would additionally need spatial tiling of the window; typical SR crops fit.

    out = None
    if _WINDOW_DMA_OK[0]:
        try:
            out = _crop_window_dma(x3, top, left, height, width, budget)
        except Exception:                   # lowering limitation -> safe path
            _WINDOW_DMA_OK[0] = False
    if out is None:
        out = _crop_full_copy(x3, top, left, height, width, budget)
    return out.reshape(*lead, height, width) if lead else out.reshape(height, width)


# ------------------------ CenterCrop module (JAX) -------------------------- #

def to_tuple(sz, dim, name):
    if isinstance(sz, numbers.Number):
        return (sz,) * dim
    if isinstance(sz, tuple):
        if len(sz) == 1:
            return sz * dim
        elif len(sz) == dim:
            return sz
    raise ValueError(f"Expected a number of {dim}-tuple for {name}")


def check_size_valid(size, scales, name):
    width, height = size
    for ws, hs in scales:
        if width % ws != 0:
            raise ValueError(f"Scale {ws} is incompatible with {name} {width}")
        if height % hs != 0:
            raise ValueError(f"Scale {hs} is incompatible with {name} {height}")


def get_image_size(img):
    if img.ndim < 3:
        raise ValueError("Unsupported array (should have 3 dimensions or more)")
    return (img.shape[-1], img.shape[-2])


def get_crop_params(x, scales):
    if not isinstance(x, (list, tuple)):
        return (get_image_size(x), [(1, 1)])
    assert len(x) == len(scales)
    sizes = [get_image_size(img) for img in x]
    scaled_widths = [sc[0] * sz[0] for sc, sz in zip(scales, sizes)]
    scaled_heights = [sc[1] * sz[1] for sc, sz in zip(scales, sizes)]
    min_width = min(scaled_widths)
    min_height = min(scaled_heights)
    if max(scaled_widths) > min_width * 1.05:
        raise ValueError("Scaled widths do not seem compatible")
    if max(scaled_heights) > min_height * 1.05:
        raise ValueError("Scaled heights do not seem compatible")
    pixels_x = int(functools.reduce(np.lcm, [sc[0] for sc in scales]))
    pixels_y = int(functools.reduce(np.lcm, [sc[1] for sc in scales]))
    common_size = (min_width // pixels_x, min_height // pixels_y)
    size_ratios = [(pixels_x // sc[0], pixels_y // sc[1]) for sc in scales]
    return (common_size, size_ratios)


class CenterCropPallas:
    """JAX/Pallas port of torchsr CenterCrop.

    Accepts a single (..., H, W) array (e.g. NCHW) or a list of such arrays
    (multi-scale).  The deterministic center-crop window is computed from
    static shapes and the data movement runs in the Pallas kernels above.
    """
    # TODO(synk): PIL / numpy-HWC image inputs from the original module are
    # not supported; only channel-first jnp arrays are handled here.

    def __init__(self, size, scales, allow_smaller=False):
        self.size = to_tuple(size, 2, "CenterCrop.size")
        self.allow_smaller = allow_smaller
        self.scales = [to_tuple(s, 2, "CenterCrop.scale") for s in scales]
        check_size_valid(self.size, self.scales, "CenterCrop.size")

    def __call__(self, x):
        scales = self.scales
        common_size, size_ratios = get_crop_params(x, scales)
        crop_ratio = size_ratios[0]
        common_crop_size = (self.size[0] // crop_ratio[0],
                            self.size[1] // crop_ratio[1])
        w, h = common_size
        tw, th = common_crop_size
        if th > h:
            if not self.allow_smaller:
                raise ValueError(
                    "Required height for CenterCrop is larger than the image")
            th = h
            i = 0
        else:
            i = (h - th) // 2
        if tw > w:
            if not self.allow_smaller:
                raise ValueError(
                    "Required width for CenterCrop is larger than the image")
            tw = w
            j = 0
        else:
            j = (w - tw) // 2
        if not isinstance(x, (list, tuple)):
            return pallas_crop(x, i, j, th, tw)
        ret = []
        for img, (rw, rh) in zip(x, size_ratios):
            ret.append(pallas_crop(img, i * rh, j * rw, th * rh, tw * rw))
        return ret


# --------------------------------- main ------------------------------------ #

if __name__ == "__main__":
    key = jax.random.PRNGKey(0)
    kx, klr, kr = jax.random.split(key, 3)

    # Single-tensor case: NCHW (2, 4, 16, 16) center-cropped to 8x8.
    x = jax.random.normal(kx, (2, 4, 16, 16), dtype=jnp.float32)
    cc = CenterCropPallas(size=8, scales=[1])
    out = jax.block_until_ready(cc(x))
    assert out.shape == (2, 4, 8, 8), out.shape
    ref = x[:, :, 4:12, 4:12]  # i = j = (16 - 8) // 2 = 4
    np.testing.assert_array_equal(np.asarray(out), np.asarray(ref))

    # Multi-scale list case: HR (16x16, scale 1) + LR (8x8, scale 2).
    x_lr = jax.random.normal(klr, (2, 4, 8, 8), dtype=jnp.float32)
    cc2 = CenterCropPallas(size=8, scales=[1, 2])
    outs = jax.block_until_ready(cc2([x, x_lr]))
    assert outs[0].shape == (2, 4, 8, 8), outs[0].shape
    assert outs[1].shape == (2, 4, 4, 4), outs[1].shape
    np.testing.assert_array_equal(np.asarray(outs[0]),
                                  np.asarray(x[:, :, 4:12, 4:12]))
    np.testing.assert_array_equal(np.asarray(outs[1]),
                                  np.asarray(x_lr[:, :, 2:6, 2:6]))

    # Non-float dtype: the crop must stay bit-exact.
    xi = jax.random.randint(kx, (2, 4, 16, 16), 0, 255, dtype=jnp.int32)
    outi = jax.block_until_ready(cc(xi))
    np.testing.assert_array_equal(np.asarray(outi),
                                  np.asarray(xi[:, :, 4:12, 4:12]))

    # Ragged plane count (prime P=7) + off-center window: exercises the
    # statically-sized last block and unaligned crop offsets.
    xr = jax.random.normal(kr, (7, 16, 16), dtype=jnp.float32)
    outr = jax.block_until_ready(pallas_crop(xr, 3, 5, 9, 6))
    np.testing.assert_array_equal(np.asarray(outr), np.asarray(xr[:, 3:12, 5:11]))

    print("KERNEL_OK")
</pallas_src>

<mosaic_0001>
module attributes {stable_mosaic.version = 11 : i64} {
  func.func @_center_crop_dma_kernel(%arg0: i32, %arg1: memref<8x16x16xf32, #tpu.memory_space<any>>, %arg2: memref<2x8x8xf32, #tpu.memory_space<vmem>>, %arg3: memref<!tpu.dma_semaphore, #tpu.memory_space<semaphore_mem>>) attributes {dimension_semantics = [#tpu.dimension_semantics<parallel>], iteration_bounds = array<i64: 4>, scalar_prefetch = 0 : i64, scratch_operands = 1 : i64, tpu.core_type = #tpu.core_type<tc>, window_params = [{}, {transform_indices = @transform_1, window_bounds = array<i64: 2, 8, 8>}]} {
    %c2_i32 = arith.constant 2 : i32
    %0 = arith.muli %arg0, %c2_i32 : i32
    %c4_i32 = arith.constant 4 : i32
    %c4_i32_0 = arith.constant 4 : i32
    %1 = tpu.memref_slice %arg1[%0, %c4_i32, %c4_i32_0] : memref<8x16x16xf32, #tpu.memory_space<any>> -> memref<2x8x8xf32, #tpu.memory_space<any>>
    %c0_i32 = arith.constant 0 : i32
    %c0_i32_1 = arith.constant 0 : i32
    %c0_i32_2 = arith.constant 0 : i32
    %2 = tpu.memref_slice %arg2[%c0_i32, %c0_i32_1, %c0_i32_2] : memref<2x8x8xf32, #tpu.memory_space<vmem>> -> memref<2x8x8xf32, #tpu.memory_space<vmem>>
    tpu.enqueue_dma source(%1 : memref<2x8x8xf32, #tpu.memory_space<any>>) target(%2 : memref<2x8x8xf32, #tpu.memory_space<vmem>>) target_semaphore(%arg3 : memref<!tpu.dma_semaphore, #tpu.memory_space<semaphore_mem>>)
    %c4_i32_3 = arith.constant 4 : i32
    %c4_i32_4 = arith.constant 4 : i32
    %3 = tpu.memref_slice %arg1[%0, %c4_i32_3, %c4_i32_4] : memref<8x16x16xf32, #tpu.memory_space<any>> -> memref<2x8x8xf32, #tpu.memory_space<any>>
    %c0_i32_5 = arith.constant 0 : i32
    %c0_i32_6 = arith.constant 0 : i32
    %c0_i32_7 = arith.constant 0 : i32
    %4 = tpu.memref_slice %arg2[%c0_i32_5, %c0_i32_6, %c0_i32_7] : memref<2x8x8xf32, #tpu.memory_space<vmem>> -> memref<2x8x8xf32, #tpu.memory_space<vmem>>
    tpu.wait_dma2 semaphore(%arg3 : memref<!tpu.dma_semaphore, #tpu.memory_space<semaphore_mem>>) src(%3 : memref<2x8x8xf32, #tpu.memory_space<any>>) dst(%4 : memref<2x8x8xf32, #tpu.memory_space<vmem>>)
    return
  }
  func.func @transform_1(%arg0: i32) -> (i32, i32, i32) {
    %c0_i32 = arith.constant 0 : i32
    %c0_i32_0 = arith.constant 0 : i32
    %c0_i32_1 = arith.constant 0 : i32
    return %arg0, %c0_i32, %c0_i32_0 : i32, i32, i32
  }
}

module attributes {stable_mosaic.version = 11 : i64} {
  func.func @_center_crop_copy_kernel(%arg0: i32, %arg1: memref<2x16x16xf32, #tpu.memory_space<vmem>>, %arg2: memref<2x8x8xf32, #tpu.memory_space<vmem>>) attributes {dimension_semantics = [#tpu.dimension_semantics<parallel>], iteration_bounds = array<i64: 4>, scalar_prefetch = 0 : i64, scratch_operands = 0 : i64, tpu.core_type = #tpu.core_type<tc>, window_params = [{transform_indices = @transform_0, window_bounds = array<i64: 2, 16, 16>}, {transform_indices = @transform_1, window_bounds = array<i64: 2, 8, 8>}]} {
    %c0 = arith.constant 0 : index
    %c4 = arith.constant 4 : index
    %c4_0 = arith.constant 4 : index
    %0 = vector.load %arg1[%c0, %c4, %c4_0] : memref<2x16x16xf32, #tpu.memory_space<vmem>>, vector<2x8x8xf32>
    %c0_1 = arith.constant 0 : index
    %c0_2 = arith.constant 0 : index
    %c0_3 = arith.constant 0 : index
    %1 = vector.load %arg2[%c0_1, %c0_2, %c0_3] : memref<2x8x8xf32, #tpu.memory_space<vmem>>, vector<2x8x8xf32>
    tpu.vector_store %arg2[%c0_1, %c0_2, %c0_3], %0 {strides = array<i32>} : memref<2x8x8xf32, #tpu.memory_space<vmem>>, vector<2x8x8xf32>,
    return
  }
  func.func @transform_0(%arg0: i32) -> (i32, i32, i32) {
    %c0_i32 = arith.constant 0 : i32
    %c0_i32_0 = arith.constant 0 : i32
    %c0_i32_1 = arith.constant 0 : i32
    return %arg0, %c0_i32, %c0_i32_0 : i32, i32, i32
  }
  func.func @transform_1(%arg0: i32) -> (i32, i32, i32) {
    %c0_i32 = arith.constant 0 : i32
    %c0_i32_0 = arith.constant 0 : i32
    %c0_i32_1 = arith.constant 0 : i32
    return %arg0, %c0_i32, %c0_i32_0 : i32, i32, i32
  }
}

</mosaic_0001>

<bundles_post_ra>
// kernel: tpu_custom_call.1
= control target key start
LH: loop header
LB: loop body
LE: loop exit
PB: predicated region body
PF: predicated region fallthrough
CT: control target
= control target key end

     0   :  { %6 = vsyncpa [#allocation3], 0  ;;  %s583_s0 = inlined_call_operand.hbm [shape: f32[8,16,16], index: 0, kind: input, shape index: {}]   ;;  %s584_s1 = inlined_call_operand.hbm [shape: f32[8,8,8], index: 1, kind: output, shape index: {}]  }
   0x1   :  { %8 = vsyncpa [#allocation3 + $0x1], 0 }
   0x2   :  { %9 = vsyncpa [#allocation4], 0 }
   0x3   :  { %11 = vsyncpa [#allocation4 + $0x1], 0  ;;  %s422_s6 = smov 0   ;;  %s424_s7 = smov 0  }
   0x4   :  { %s426_s8 = smov 0   ;;  %s428_s9 = smov 0  }
   0x5 LB: > { %s443_s10 = sadd.s32 4294967295, %s403_s9   ;;  %s238_s11 = sadd.s32 4294967294, %s403_s9   ;;  %s403_s9 = sphi %s428_s9, %s596_s9   ;;  %s399_s8 = sphi %s426_s8, %s595_s8   ;;  %s395_s7 = sphi %s424_s7, %s594_s7   ;;  %s391_s6 = sphi %s422_s6, %s593_s6  }
   0x6   : > { %s447_s12 = sadd.s32 1, %s403_s9   ;;  %s24_s13 = sadd.s32 1, %s399_s8 }
   0x7   : > { %s21_s14 = ssub.s32 %s403_s9, %s447_s12  ;;  %p31_p0 = scmp.ne.s32.totalorder %s399_s8, %s395_s7 }
   0x8   : > { %p22_p1 = scmp.eq.s32.totalorder %s21_s14, 0  ;;  %p32_p2 = scmp.eq.s32.totalorder %s403_s9, 0 }
   0x9   : > { %p37_p3 = scmp.ne.s32.totalorder %s395_s7, %s391_s6  ;;  %p38_p4 = scmp.eq.s32.totalorder %s443_s10, 0 }
   0xa   : > { %s459_s15 = scalar_select %p22_p1, %s399_s8, %s24_s13  }
   0xb   : > { %p461_p5 = por %p32_p2, %p31_p0  ;;  %p465_p6 = por %p38_p4, %p37_p3 }
   0xc   : > { %p61_p7 = scmp.eq.s32.totalorder %s443_s10, 3  ;;  %p67_p8 = scmp.eq.s32.totalorder %s238_s11, 3 }
   0xd   : > { %p268_p9 = scmp.lt.s32.totalorder %s403_s9, 4  ;;  %s87_s20 = sand.u32 1, %s399_s8  }
   0xe   : > { %p471_p10 = por %p61_p7, %p31_p0  ;;  %p475_p11 = por %p67_p8, %p37_p3 }
   0xf   : > { %s254_s21 = sshll.u32 %s403_s9, 9  ;;  %s241_s22 = sshll.u32 %s87_s20, 5 }
  0x10   : > { %s588_s18 = scalar_select %p471_p10, 1, 0 }
  0x11   : > { %s589_s19 = scalar_select %p475_p11, 1, 0 }
  0x12   : > { %s484_s25 = scalar_lea.hbm %s583_s0, %s254_s21  ;;  %s91_s26 = scalar_lea.vmem [#allocation2], %s241_s22 }
  0x13   : > { %s99_s27 = sshll.u32 %s91_s26, 4  ;;  %p488_p12 = pnand %p268_p9, %p461_p5  ;;  %s492_s27 = int_to_ptr.vmem [resolvable:$true] %s99_s27 }
  0x14   : > { %s494_s29 = scalar_lea.sflag [#allocation3], %s87_s20  ;;  %s307_s30 = scalar_lea.hbm %s484_s25, 512 }
  0x15   : > { %p308_p13 = scmp.ne.s32.totalorder %s484_s25, %s307_s30  ;;  %p309_p0 = pneg %p488_p12 }
  0x16   : > { %s312_s4 = scalar_lea.hbm %s583_s0, 2048  ;;  %p313_p3 = scmp.lt.u32.totalorder %s484_s25, %s583_s0 }
  0x17   : > { %p310_p1 = pnand %p309_p0, %p308_p13  ;;  %p314_p4 = scmp.lt.u32.totalorder %s312_s4, %s307_s30 }
  0x18   : > { %p316_p7 = scmp.lt.u32.totalorder %s307_s30, %s484_s25 }
  0x19   : > { %p311_p2 = pneg %p310_p1  ;;  %p315_p5 = por %p314_p4, %p313_p3 }
  0x1b   : > { %p317_p8 = por %p316_p7, %p315_p5 }
  0x1d   : > { %p318_p9 = pnand %p317_p8, %p311_p2 }
  0x1f   : > { %321 = shalt.err (!%p318_p9)
}
  0x20   : > { %s322_s13 = scalar_lea.vmem %s492_s27, 512  ;;  %s405_s14 = smov [#allocation2]  }
  0x21   : > { %p323_p13 = scmp.ne.s32.totalorder %s492_s27, %s322_s13  ;;  %s327_s16 = sshll.u32 %s405_s14, 4  ;;  %s328_s16 = int_to_ptr.vmem [resolvable:$false] %s327_s16 }
  0x22   : > { %s329_s20 = scalar_lea.vmem %s328_s16, 1024  ;;  %p330_p10 = scmp.lt.s32.totalorder %s492_s27, %s328_s16 }
  0x23   : > { %p325_p1 = pnand %p323_p13, %p309_p0  ;;  %p331_p3 = scmp.lt.s32.totalorder %s329_s20, %s322_s13 }
  0x25   : > { %p326_p11 = pneg %p325_p1  ;;  %p332_p4 = por %p331_p3, %p330_p10 }
  0x27   : > { %p333_p5 = pnand %p332_p4, %p326_p11 }
  0x29   : > { %336 = shalt.err (!%p333_p5)
}
  0x2a   : > { %s406_s21 = smov 128   ;;  %s407_s22 = smov 8  }
  0x2b   : > { %263 = dma.hbm_to_vmem [thread:$0]  (!%p488_p12), %s484_s25, 512, %s492_s27, %s494_s29, %s406_s21, %s406_s21, %s407_s22  }
  0x2c   : > { %p245_p0 = scmp.ge.s32.totalorder %s403_s9, 1  ;;  %p107_p2 = scmp.lt.s32.totalorder %s403_s9, 5 }
  0x2e   : > { %p108_p7 = pnand %p245_p0, %p107_p2 }
  0x2f   : > { %s525_s23 = sand.u32 (!%p108_p7), 1, %s395_s7  }
  0x30   : > { %111 = sbr.rel (%p108_p7) target bundleno = 191 (0xbf), region = 24  ;;  %s246_s24 = sshll.u32 (!%p108_p7), %s525_s23, 5 }
  0x31   : > { %s114_s26 = scalar_lea.sflag (!%p108_p7), [#allocation3], %s525_s23  ;;  %s117_s30 = scalar_lea.vmem (!%p108_p7), [#allocation2], %s246_s24 }
  0x37   : > { %382 = dma.done.wait (%p465_p6), %s114_s26, 512  }
  0x38   : > { %384 = vsyncadd (%p465_p6), %s114_s26, 4294966784  ;;  %v138_v0 = vld [vmem:[%s117_s30 + $0x4] sm:$0xff]  ;;  %s408_s25 = smov 124   ;;  %v139_v1 = vld [vmem:[%s117_s30 + $0x14] sm:$0xff]  ;;  %s247_s27 = sshll.u32 %s525_s23, 4  ;;  %vm148_vm0 = vcmask 64512  }
  0x39   : > { %142 = vrot.lane.b32.xlu0 %v138_v0, %s408_s25  ;;  %s135_s28 = scalar_lea.vmem [#allocation5], %s247_s27  ;;  %s255_s2 = sshll.u32 %s443_s10, 8 }
  0x3a   : > { %s165_s29 = sshll.u32 %s135_s28, 4  ;;  %s540_s4 = scalar_lea.hbm %s584_s1, %s255_s2  ;;  %s535_s29 = int_to_ptr.vmem [resolvable:$true] %s165_s29 }
  0x3b   : > { %s152_s5 = scalar_lea.sflag [#allocation4], %s525_s23  ;;  %s337_s11 = scalar_lea.vmem %s535_s29, 256 }
  0x3c   : > { %p338_p6 = scmp.ne.s32.totalorder %s535_s29, %s337_s11  ;;  %p591_p10 = scmp.ne.s32.totalorder %s588_s18, 0 }
  0x3d   : > { %144 = vrot.lane.b32.xlu0 %v139_v1, %s408_s25  ;;  %s409_s10 = smov [#allocation5]  }
  0x3e   : > { %p339_p11 = pnand %p338_p6, %p591_p10  ;;  %s341_s13 = sshll.u32 %s409_s10, 4  ;;  %s342_s13 = int_to_ptr.vmem [resolvable:$false] %s341_s13 }
  0x3f   : > { %s343_s14 = scalar_lea.vmem %s342_s13, 512  ;;  %p344_p8 = scmp.lt.s32.totalorder %s535_s29, %s342_s13 }
  0x40   : > { %p340_p12 = pneg %p339_p11  ;;  %p345_p9 = scmp.lt.s32.totalorder %s343_s14, %s337_s11 }
  0x42   : > { %p346_p13 = por %p345_p9, %p344_p8 }
  0x44   : > { %p347_p1 = pnand %p346_p13, %p340_p12 }
  0xab   : > { %v143_v2 = vpop.permute.xlu0 %142 }
  0xac   : > { %149 = vst.msk [vmem:[%s135_s28] sm:$0xff] %vm148_vm0, %v143_v2 }
  0xaf   : > { %v145_v3 = vpop.permute.xlu0 %144 }
  0xb0   : > { %150 = vst.msk [vmem:[%s135_s28 + $0x8] sm:$0xff] %vm148_vm0, %v145_v3 }
  0xb1   : > { %350 = shalt.err (!%p347_p1)
}
  0xb2   : > { %s351_s16 = scalar_lea.hbm %s540_s4, 256  ;;  %s355_s22 = scalar_lea.hbm %s584_s1, 1024 }
  0xb3   : > { %p352_p3 = scmp.ne.s32.totalorder %s540_s4, %s351_s16  ;;  %p356_p0 = scmp.lt.u32.totalorder %s540_s4, %s584_s1 }
  0xb4   : > { %p357_p2 = scmp.lt.u32.totalorder %s355_s22, %s351_s16  ;;  %p359_p6 = scmp.lt.u32.totalorder %s351_s16, %s540_s4 }
  0xb5   : > { %p353_p4 = pnand %p352_p3, %p591_p10 }
  0xb6   : > { %p358_p7 = por %p357_p2, %p356_p0 }
  0xb7   : > { %p354_p5 = pneg %p353_p4 }
  0xb8   : > { %p360_p11 = por %p359_p6, %p358_p7 }
  0xba   : > { %p361_p12 = pnand %p360_p11, %p354_p5 }
  0xbc   : > { %364 = shalt.err (!%p361_p12)
}
  0xbd   : > { %s410_s30 = smov 128   ;;  %s411_s25 = smov 8  }
  0xbe   : > { %258 = dma.vmem_to_hbm [thread:$0]  (%p591_p10), %s535_s29, 256, %s540_s4, %s152_s5, %s410_s30, %s410_s30, %s411_s25  }
  0xbf PF: > { %p269_p8 = scmp.ge.s32.totalorder %s403_s9, 2  ;;  %s180_s27 = sand.u32 1, %s391_s6  }
  0xc0   : > { %p592_p9 = scmp.ne.s32.totalorder %s589_s19, 0  ;;  %s181_s28 = scalar_lea.sflag [#allocation4], %s180_s27 }
  0xc2   : > { %p265_p13 = pnand %p269_p8, %p592_p9 }
  0xc4   : > { %386 = dma.done.wait (!%p265_p13), %s181_s28, 256  }
  0xc5   : > { %388 = vsyncadd (!%p265_p13), %s181_s28, 4294967040  ;;  %p14_p1 = scmp.ge.s32.totalorder %s447_s12, 6   ;;  %s593_s6 = smov %s395_s7 }
  0xc6   : > { %s594_s7 = smov %s399_s8  ;;  %s595_s8 = smov %s459_s15 }
  0xc7   : > { %s596_s9 = smov %s447_s12  ;;  %16 = sbr.rel (!%p14_p1) target bundleno = 5 (0x5), region = 69 }
  0xce   :  { %186 = vsyncpa [#allocation3], 1 }
  0xcf   :  { %188 = vsyncpa [#allocation3 + $0x1], 1 }
  0xd0   :  { %189 = vsyncpa [#allocation4], 1 }
  0xd1   :  { %191 = vsyncpa [#allocation4 + $0x1], 1 }

</bundles_post_ra>
